<compile_context>
chip_gen: v6e
topology: v6e:2x2x1
jax: 0.10.0
libtpu: 0.0.40
codegen_flags: <defaults>
</compile_context>

<pallas_src>
import functools

import jax
import jax.numpy as jnp
from jax.experimental import pallas as pl
from jax.experimental.pallas import tpu as pltpu


# --------------------------------------------------------------------------- #
# Tiling helper
# --------------------------------------------------------------------------- #
def _pick_tile(total, max_tile):
    """Largest divisor of `total` that is <= max_tile and a multiple of 8
    (TPU sublane rule for partial blocks); falls back to the whole extent."""
    if total <= max_tile:
        return total
    for cand in range(min(max_tile, total), 7, -1):
        if total % cand == 0 and cand % 8 == 0:
            return cand
    return total


# --------------------------------------------------------------------------- #
# Fused conv kernel (single conv, or full ResConv1DBlock when fuse_res=True).
# grid = (N, T_tiles); the full-T input block is resident across the tile axis.
# --------------------------------------------------------------------------- #
def _conv_kernel(x_ref, w1_ref, b1_ref, *rest, K, dilation, pad, t_tile,
                 relu_in, relu_out, fuse_res):
    if fuse_res:
        w2_ref, b2_ref, o_ref, xpad_ref = rest
    else:
        o_ref, xpad_ref = rest

    T_in, Cin = x_ref.shape
    span = dilation * (K - 1)
    tb = pl.program_id(1)

    # Stage the zero-padded input once per batch element (tb axis is sequential).
    @pl.when(tb == 0)
    def _stage():
        if pad > 0:
            zeros = jnp.zeros((pad, Cin), jnp.float32)
            xpad_ref[0:pad, :] = zeros
            xpad_ref[pad + T_in:pad + T_in + pad, :] = zeros
        xpad_ref[pad:pad + T_in, :] = x_ref[...]

    t0 = pl.multiple_of(tb * t_tile, t_tile)
    win_raw = xpad_ref[pl.ds(t0, t_tile + span), :]          # (t_tile+span, Cin) f32
    win = jnp.maximum(win_raw, 0.0) if relu_in else win_raw

    # im2col: one deep MXU matmul instead of K shallow ones.
    taps = [win[k * dilation:k * dilation + t_tile, :] for k in range(K)]
    xim = jnp.concatenate(taps, axis=-1) if K > 1 else taps[0]
    acc = jnp.dot(xim.astype(jnp.bfloat16), w1_ref[...],
                  preferred_element_type=jnp.float32)
    acc = acc + b1_ref[...]

    if fuse_res:
        # ResConv1DBlock tail: relu -> conv1x1 -> + residual, all in VMEM.
        h = jnp.maximum(acc, 0.0)
        acc = jnp.dot(h.astype(jnp.bfloat16), w2_ref[...],
                      preferred_element_type=jnp.float32)
        acc = acc + b2_ref[...]
        acc = acc + win_raw[pad:pad + t_tile, :]             # pre-relu residual
    if relu_out:
        acc = jnp.maximum(acc, 0.0)
    o_ref[...] = acc


def _conv_pallas(x, w1, b1, w2=None, b2=None, *, K, dilation=1, pad=0,
                 relu_in=False, relu_out=False, fuse_res=False, max_t_tile=128):
    N, T_in, Cin = x.shape
    KC, C_mid = w1.shape
    assert KC == K * Cin, (KC, K, Cin)
    if fuse_res:
        assert w2.shape[0] == C_mid
        C_out = w2.shape[1]
        assert C_out == Cin          # residual add requires matching channels
    else:
        C_out = C_mid

    span = dilation * (K - 1)
    T_out = T_in + 2 * pad - span
    assert T_out >= 1
    t_tile = _pick_tile(T_out, max_t_tile)
    n_t = T_out // t_tile

    kern = functools.partial(_conv_kernel, K=K, dilation=dilation, pad=pad,
                             t_tile=t_tile, relu_in=relu_in, relu_out=relu_out,
                             fuse_res=fuse_res)

    in_specs = [
        pl.BlockSpec((None, T_in, Cin), lambda n, tb: (n, 0, 0)),   # resident over tb
        pl.BlockSpec((KC, C_mid), lambda n, tb: (0, 0)),
        pl.BlockSpec((1, C_mid), lambda n, tb: (0, 0)),
    ]
    args = [x, w1, b1]
    if fuse_res:
        in_specs += [pl.BlockSpec((C_mid, C_out), lambda n, tb: (0, 0)),
                     pl.BlockSpec((1, C_out), lambda n, tb: (0, 0))]
        args += [w2, b2]

    return pl.pallas_call(
        kern,
        grid=(N, n_t),
        in_specs=in_specs,
        out_specs=pl.BlockSpec((None, t_tile, C_out), lambda n, tb: (n, tb, 0)),
        out_shape=jax.ShapeDtypeStruct((N, T_out, C_out), jnp.float32),
        scratch_shapes=[pltpu.VMEM((T_in + 2 * pad, Cin), jnp.float32)],
        compiler_params=pltpu.CompilerParams(
            dimension_semantics=("parallel", "arbitrary")),
    )(*args)


def conv1d(x, par, *, K, dilation=1, pad=0, relu_in=False, relu_out=False,
           max_t_tile=128):
    return _conv_pallas(x, par["w"], par["b"], K=K, dilation=dilation, pad=pad,
                        relu_in=relu_in, relu_out=relu_out,
                        max_t_tile=max_t_tile)


def resblock(x, par, *, max_t_tile=128):
    d = par["dil"]
    return _conv_pallas(x, par["w1"], par["b1"], par["w2"], par["b2"],
                        K=3, dilation=d, pad=d, relu_in=True, relu_out=False,
                        fuse_res=True, max_t_tile=max_t_tile)


# --------------------------------------------------------------------------- #
# Quantizer (eval-mode EMA-reset): NT-tiled, codebook resident, accumulators in
# scratch, loss / perplexity finalized on the last grid step.
# --------------------------------------------------------------------------- #
def _quantize_kernel(x_ref, cb_ref, xd_ref, loss_ref, perp_ref,
                     counts_ref, sse_ref, *, total_elems):
    i = pl.program_id(0)

    @pl.when(i == 0)
    def _init():
        counts_ref[...] = jnp.zeros_like(counts_ref)
        sse_ref[...] = jnp.zeros_like(sse_ref)

    x = x_ref[...]                                           # (t, C) f32
    cb = cb_ref[...]                                         # (E, C) f32
    E = cb.shape[0]

    xc = jax.lax.dot_general(x, cb, (((1,), (1,)), ((), ())),
                             preferred_element_type=jnp.float32)   # (t, E)
    c2 = jnp.swapaxes(jnp.sum(cb * cb, axis=-1, keepdims=True), 0, 1)
    d = c2 - 2.0 * xc          # per-row |x|^2 dropped: same argmin, fewer ops

    dmin = jnp.min(d, axis=-1, keepdims=True)
    lane = jax.lax.broadcasted_iota(jnp.int32, d.shape, 1)
    idx = jnp.min(jnp.where(d <= dmin, lane, E), axis=-1, keepdims=True)
    onehot = (lane == idx).astype(jnp.float32)               # (t, E), first argmin

    xd = jnp.dot(onehot, cb, preferred_element_type=jnp.float32)   # (t, C)
    diff = x - xd

    counts_ref[...] += jnp.sum(onehot, axis=0, keepdims=True)
    sse_ref[...] += jnp.reshape(jnp.sum(diff * diff), (1, 1))
    xd_ref[...] = xd

    @pl.when(i == pl.num_programs(0) - 1)
    def _finalize():
        counts = counts_ref[...]
        prob = counts / jnp.sum(counts)
        perp = jnp.exp(-jnp.sum(prob * jnp.log(prob + 1e-7)))
        loss_ref[...] = sse_ref[...] / total_elems           # F.mse_loss(x, x_d)
        perp_ref[...] = jnp.reshape(perp, (1, 1))


def quantize(z_flat, codebook, *, max_tile=256):
    NT, C = z_flat.shape
    E = codebook.shape[0]
    t = _pick_tile(NT, max_tile)
    n_t = NT // t
    xd, loss, perp = pl.pallas_call(
        functools.partial(_quantize_kernel, total_elems=float(NT * C)),
        grid=(n_t,),
        in_specs=[pl.BlockSpec((t, C), lambda i: (i, 0)),
                  pl.BlockSpec((E, C), lambda i: (0, 0))],
        out_specs=(pl.BlockSpec((t, C), lambda i: (i, 0)),
                   pl.BlockSpec((1, 1), lambda i: (0, 0)),
                   pl.BlockSpec((1, 1), lambda i: (0, 0))),
        out_shape=(jax.ShapeDtypeStruct((NT, C), jnp.float32),
                   jax.ShapeDtypeStruct((1, 1), jnp.float32),
                   jax.ShapeDtypeStruct((1, 1), jnp.float32)),
        scratch_shapes=[pltpu.VMEM((1, E), jnp.float32),
                        pltpu.VMEM((1, 1), jnp.float32)],
        compiler_params=pltpu.CompilerParams(
            dimension_semantics=("arbitrary",)),
    )(z_flat, codebook)
    return xd, loss[0, 0], perp[0, 0]


# --------------------------------------------------------------------------- #
# Parameters: raw (PyTorch Conv1d layout) + packing into kernel-ready form.
# --------------------------------------------------------------------------- #
def _conv_raw(key, K, cin, cout):
    kw, kb = jax.random.split(key)
    bound = 1.0 / float(K * cin) ** 0.5
    w = jax.random.uniform(kw, (K, cin, cout), jnp.float32, -bound, bound)
    b = jax.random.uniform(kb, (cout,), jnp.float32, -bound, bound)
    return {"w": w, "b": b}


def init_raw_params(key, in_dim, width, embed_dim, n_embed, down_t, stride_t,
                    depth, rate):
    keys = iter(jax.random.split(key, 256))
    # reverse_dilation=True (T2M-GPT Resnet1D default / Decoder explicit)
    dilations = [rate ** d for d in range(depth)][::-1]

    enc = {"conv_in": _conv_raw(next(keys), 3, in_dim, width), "blocks": []}
    for _ in range(down_t):
        enc["blocks"].append({
            "down": _conv_raw(next(keys), stride_t * 2, width, width),
            "res": [{"c1": _conv_raw(next(keys), 3, width, width),
                     "c2": _conv_raw(next(keys), 1, width, width),
                     "dil": d} for d in dilations],
        })
    enc["conv_out"] = _conv_raw(next(keys), 3, width, embed_dim)

    dec = {"conv_in": _conv_raw(next(keys), 3, embed_dim, width), "blocks": []}
    for _ in range(down_t):
        dec["blocks"].append({
            "res": [{"c1": _conv_raw(next(keys), 3, width, width),
                     "c2": _conv_raw(next(keys), 1, width, width),
                     "dil": d} for d in dilations],
            "up": _conv_raw(next(keys), 3, width, width),
        })
    dec["conv_mid"] = _conv_raw(next(keys), 3, width, width)
    dec["conv_out"] = _conv_raw(next(keys), 3, width, in_dim)

    codebook = jax.random.normal(next(keys), (n_embed, embed_dim), jnp.float32)
    return {"enc": enc, "dec": dec, "codebook": codebook}


def _pack(par):
    w, b = par["w"], par["b"]
    K, cin, cout = w.shape
    return {"w": w.reshape(K * cin, cout).astype(jnp.bfloat16),
            "b": b.reshape(1, cout).astype(jnp.float32)}


def _pack_down(par):
    # stride-2 / K=4 / pad=1 conv on x  ==  stride-1 / K=3 / pad=1 conv on
    # y = x.reshape(N, T/2, 2C)  with masked, rearranged weights.
    w, b = par["w"], par["b"]              # (4, C, Cout)
    _, C, cout = w.shape
    z = jnp.zeros((C, cout), w.dtype)
    wt = jnp.stack([jnp.concatenate([z, w[0]], axis=0),
                    jnp.concatenate([w[1], w[2]], axis=0),
                    jnp.concatenate([w[3], z], axis=0)], axis=0)   # (3, 2C, Cout)
    return {"w": wt.reshape(3 * 2 * C, cout).astype(jnp.bfloat16),
            "b": b.reshape(1, cout).astype(jnp.float32)}


def _pack_up(par):
    # Upsample(x2, nearest) + K=3/pad=1 conv  ==  K=3/pad=1 conv on h producing
    # 2*Cout lanes (out[2t] | out[2t+1]), followed by a free host reshape.
    w, b = par["w"], par["b"]              # (3, C, Cout)
    _, C, cout = w.shape
    z = jnp.zeros((C, cout), w.dtype)
    wt = jnp.stack([jnp.concatenate([w[0], z], axis=1),
                    jnp.concatenate([w[1] + w[2], w[0] + w[1]], axis=1),
                    jnp.concatenate([z, w[2]], axis=1)], axis=0)   # (3, C, 2Cout)
    return {"w": wt.reshape(3 * C, 2 * cout).astype(jnp.bfloat16),
            "b": jnp.concatenate([b, b]).reshape(1, 2 * cout).astype(jnp.float32)}


def _pack_res(rb):
    c1, c2 = rb["c1"], rb["c2"]
    K1, cin1, cout1 = c1["w"].shape
    return {"w1": c1["w"].reshape(K1 * cin1, cout1).astype(jnp.bfloat16),
            "b1": c1["b"].reshape(1, cout1).astype(jnp.float32),
            "w2": c2["w"][0].astype(jnp.bfloat16),
            "b2": c2["b"].reshape(1, -1).astype(jnp.float32),
            "dil": rb["dil"]}


def pack_params(raw, stride_t=2):
    # TODO(synk): the fused down/up-sampling weight transforms assume stride_t=2
    # (the module default); other strides need a different repacking.
    assert stride_t == 2
    enc = {"conv_in": _pack(raw["enc"]["conv_in"]),
           "blocks": [{"down": _pack_down(blk["down"]),
                       "res": [_pack_res(rb) for rb in blk["res"]]}
                      for blk in raw["enc"]["blocks"]],
           "conv_out": _pack(raw["enc"]["conv_out"])}
    dec = {"conv_in": _pack(raw["dec"]["conv_in"]),
           "blocks": [{"res": [_pack_res(rb) for rb in blk["res"]],
                       "up": _pack_up(blk["up"])}
                      for blk in raw["dec"]["blocks"]],
           "conv_mid": _pack(raw["dec"]["conv_mid"]),
           "conv_out": _pack(raw["dec"]["conv_out"])}
    return {"enc": enc, "dec": dec, "codebook": raw["codebook"]}


# --------------------------------------------------------------------------- #
# Module composition (Pallas path)
# --------------------------------------------------------------------------- #
def encoder_apply(p, x, *, max_t_tile):
    h = conv1d(x, p["conv_in"], K=3, pad=1, relu_out=True, max_t_tile=max_t_tile)
    for blk in p["blocks"]:
        N, Tc, C = h.shape
        assert Tc % 2 == 0
        h = conv1d(h.reshape(N, Tc // 2, 2 * C), blk["down"], K=3, pad=1,
                   max_t_tile=max_t_tile)                    # fused stride-2 conv
        for rb in blk["res"]:
            h = resblock(h, rb, max_t_tile=max_t_tile)
    return conv1d(h, p["conv_out"], K=3, pad=1, max_t_tile=max_t_tile)


def decoder_apply(p, x, *, max_t_tile):
    h = conv1d(x, p["conv_in"], K=3, pad=1, relu_out=True, max_t_tile=max_t_tile)
    for blk in p["blocks"]:
        for rb in blk["res"]:
            h = resblock(h, rb, max_t_tile=max_t_tile)
        h = conv1d(h, blk["up"], K=3, pad=1, max_t_tile=max_t_tile)  # fused upsample
        N, Tc, C2 = h.shape
        h = h.reshape(N, Tc * 2, C2 // 2)                    # free row interleave
    h = conv1d(h, p["conv_mid"], K=3, pad=1, relu_out=True, max_t_tile=max_t_tile)
    return conv1d(h, p["conv_out"], K=3, pad=1, max_t_tile=max_t_tile)


def restvqvae_forward(packed, x, *, conv_t_tile=128, quant_tile=256):
    """x: (N, T, in_dim) -> (x_out (N, T, in_dim), commit_loss, perplexity)."""
    z = encoder_apply(packed["enc"], x, max_t_tile=conv_t_tile)
    N, T_enc, C = z.shape
    zq, loss, perp = quantize(z.reshape(N * T_enc, C), packed["codebook"],
                              max_tile=quant_tile)
    # straight-through x + (x_d - x).detach() has value x_d in the forward pass
    out = decoder_apply(packed["dec"], zq.reshape(N, T_enc, C),
                        max_t_tile=conv_t_tile)
    return out, loss, perp


# --------------------------------------------------------------------------- #
# Pure-JAX reference (PyTorch-equivalent math, same bf16 MXU operands)
# --------------------------------------------------------------------------- #
def _ref_conv(x, w, b, *, stride=1, dilation=1, pad=0, relu_in=False,
              relu_out=False):
    if relu_in:
        x = jnp.maximum(x, 0.0)
    xp = jnp.pad(x, ((0, 0), (pad, pad), (0, 0)))
    N, Tp, Cin = xp.shape
    K, _, Cout = w.shape
    T_out = Tp - dilation * (K - 1)
    wb = w.astype(jnp.bfloat16)
    acc = jnp.zeros((N, T_out, Cout), jnp.float32)
    for k in range(K):
        tap = xp[:, k * dilation:k * dilation + T_out, :]
        acc = acc + jnp.dot(tap.reshape(N * T_out, Cin).astype(jnp.bfloat16),
                            wb[k], preferred_element_type=jnp.float32
                            ).reshape(N, T_out, Cout)
    acc = acc + b[None, None, :]
    if relu_out:
        acc = jnp.maximum(acc, 0.0)
    if stride > 1:
        acc = acc[:, ::stride, :]
    return acc


def _ref_resblock(x, rb):
    d = rb["dil"]
    h = _ref_conv(x, rb["c1"]["w"], rb["c1"]["b"], dilation=d, pad=d,
                  relu_in=True, relu_out=True)
    return x + _ref_conv(h, rb["c2"]["w"], rb["c2"]["b"])


def _ref_forward(raw, x, stride_t):
    e = raw["enc"]
    h = _ref_conv(x, e["conv_in"]["w"], e["conv_in"]["b"], pad=1, relu_out=True)
    for blk in e["blocks"]:
        h = _ref_conv(h, blk["down"]["w"], blk["down"]["b"],
                      stride=stride_t, pad=stride_t // 2)
        for rb in blk["res"]:
            h = _ref_resblock(h, rb)
    z = _ref_conv(h, e["conv_out"]["w"], e["conv_out"]["b"], pad=1)

    N, Te, C = z.shape
    zf = z.reshape(N * Te, C)
    cb = raw["codebook"]
    d2 = (jnp.sum(zf * zf, 1, keepdims=True)
          - 2.0 * jnp.dot(zf, cb.T, precision=jax.lax.Precision.HIGHEST)
          + jnp.sum(cb * cb, 1)[None, :])
    idx = jnp.argmin(d2, axis=1)
    zq = cb[idx]
    loss = jnp.mean((zf - zq) ** 2)
    counts = jnp.sum(jax.nn.one_hot(idx, cb.shape[0], dtype=jnp.float32), axis=0)
    prob = counts / jnp.sum(counts)
    perp = jnp.exp(-jnp.sum(prob * jnp.log(prob + 1e-7)))

    dcd = raw["dec"]
    h = _ref_conv(zq.reshape(N, Te, C), dcd["conv_in"]["w"], dcd["conv_in"]["b"],
                  pad=1, relu_out=True)
    for blk in dcd["blocks"]:
        for rb in blk["res"]:
            h = _ref_resblock(h, rb)
        h = jnp.repeat(h, 2, axis=1)
        h = _ref_conv(h, blk["up"]["w"], blk["up"]["b"], pad=1)
    h = _ref_conv(h, dcd["conv_mid"]["w"], dcd["conv_mid"]["b"], pad=1,
                  relu_out=True)
    out = _ref_conv(h, dcd["conv_out"]["w"], dcd["conv_out"]["b"], pad=1)
    return out, loss, perp


# --------------------------------------------------------------------------- #
if __name__ == "__main__":
    key = jax.random.PRNGKey(0)
    k_params, k_x = jax.random.split(key)

    # Small synthetic config (module defaults are in_dim=263, width=512, ...).
    N, T, in_dim = 2, 32, 8
    width, embed_dim, n_embed = 32, 32, 64
    depth, down_t, stride_t, rate = 2, 2, 2, 3

    raw = init_raw_params(k_params, in_dim, width, embed_dim, n_embed,
                          down_t, stride_t, depth, rate)
    packed = pack_params(raw, stride_t=stride_t)
    x = jax.random.normal(k_x, (N, T, in_dim), jnp.float32)

    # Tiny tiles so the multi-tile conv grid and the NT-tiled quantizer paths
    # are actually exercised at this toy size (production defaults: 128 / 256).
    out, loss, perp = restvqvae_forward(packed, x, conv_t_tile=8, quant_tile=8)
    jax.block_until_ready((out, loss, perp))
    assert out.shape == (N, T, in_dim)
    assert loss.shape == () and perp.shape == ()

    # Pure-JAX reference check (same bf16 MXU operands, f32 accumulation).
    ref_out, ref_loss, ref_perp = _ref_forward(raw, x, stride_t)
    tol = 2e-2
    assert float(jnp.max(jnp.abs(out - ref_out))) <= tol * (
        1.0 + float(jnp.max(jnp.abs(ref_out))))
    assert abs(float(loss) - float(ref_loss)) <= tol * (1.0 + abs(float(ref_loss)))
    assert abs(float(perp) - float(ref_perp)) <= tol * (1.0 + abs(float(ref_perp)))

    print("KERNEL_OK")
</pallas_src>

<mosaic_0001>
module attributes {stable_mosaic.version = 11 : i64} {
  func.func @_conv_kernel(%arg0: i32, %arg1: i32, %arg2: memref<1x32x8xf32, #tpu.memory_space<vmem>>, %arg3: memref<24x32xbf16, #tpu.memory_space<vmem>>, %arg4: memref<1x32xf32, #tpu.memory_space<vmem>>, %arg5: memref<1x8x32xf32, #tpu.memory_space<vmem>>, %arg6: memref<34x8xf32, #tpu.memory_space<vmem>>) attributes {dimension_semantics = [#tpu.dimension_semantics<parallel>, #tpu.dimension_semantics<arbitrary>], iteration_bounds = array<i64: 2, 4>, scalar_prefetch = 0 : i64, scratch_operands = 1 : i64, tpu.core_type = #tpu.core_type<tc>, window_params = [{transform_indices = @transform_0, window_bounds = array<i64: 1, 32, 8>}, {pipeline_mode = #tpu.pipeline_mode<synchronous>, transform_indices = @transform_1, window_bounds = array<i64: 24, 32>}, {pipeline_mode = #tpu.pipeline_mode<synchronous>, transform_indices = @transform_2, window_bounds = array<i64: 1, 32>}, {transform_indices = @transform_3, window_bounds = array<i64: 1, 8, 32>}]} {
    %c0_i32 = arith.constant 0 : i32
    %0 = arith.cmpi eq, %arg1, %c0_i32 : i32
    %1 = arith.extui %0 : i1 to i32
    %c0_i32_0 = arith.constant 0 : i32
    %2 = arith.cmpi ne, %1, %c0_i32_0 : i32
    scf.if %2 {
      %cst_9 = arith.constant 0.000000e+00 : f32
      %22 = vector.broadcast %cst_9 : f32 to vector<1x8xf32>
      %c0_10 = arith.constant 0 : index
      %c0_11 = arith.constant 0 : index
      %23 = vector.load %arg6[%c0_10, %c0_11] : memref<34x8xf32, #tpu.memory_space<vmem>>, vector<1x8xf32>
      tpu.vector_store %arg6[%c0_10, %c0_11], %22 {strides = array<i32>} : memref<34x8xf32, #tpu.memory_space<vmem>>, vector<1x8xf32>,
      %c33 = arith.constant 33 : index
      %c0_12 = arith.constant 0 : index
      %24 = vector.load %arg6[%c33, %c0_12] : memref<34x8xf32, #tpu.memory_space<vmem>>, vector<1x8xf32>
      tpu.vector_store %arg6[%c33, %c0_12], %22 {strides = array<i32>} : memref<34x8xf32, #tpu.memory_space<vmem>>, vector<1x8xf32>,
      %c0_13 = arith.constant 0 : index
      %c0_14 = arith.constant 0 : index
      %c0_15 = arith.constant 0 : index
      %25 = vector.load %arg2[%c0_13, %c0_14, %c0_15] : memref<1x32x8xf32, #tpu.memory_space<vmem>>, vector<1x32x8xf32>
      %26 = vector.shape_cast %25 : vector<1x32x8xf32> to vector<32x8xf32>
      %c1 = arith.constant 1 : index
      %c0_16 = arith.constant 0 : index
      %27 = vector.load %arg6[%c1, %c0_16] : memref<34x8xf32, #tpu.memory_space<vmem>>, vector<32x8xf32>
      tpu.vector_store %arg6[%c1, %c0_16], %26 {strides = array<i32>} : memref<34x8xf32, #tpu.memory_space<vmem>>, vector<32x8xf32>,
    } else {
    }
    %c8_i32 = arith.constant 8 : i32
    %3 = arith.muli %arg1, %c8_i32 : i32
    %4 = tpu.assume_multiple %3, 8 : i32
    %5 = arith.index_cast %4 : i32 to index
    %c0 = arith.constant 0 : index
    %6 = vector.load %arg6[%5, %c0] : memref<34x8xf32, #tpu.memory_space<vmem>>, vector<10x8xf32>
    %7 = vector.extract_strided_slice %6 {offsets = [0, 0], sizes = [8, 8], strides = [1, 1]} : vector<10x8xf32> to vector<8x8xf32>
    %8 = vector.extract_strided_slice %6 {offsets = [1, 0], sizes = [8, 8], strides = [1, 1]} : vector<10x8xf32> to vector<8x8xf32>
    %9 = vector.extract_strided_slice %6 {offsets = [2, 0], sizes = [8, 8], strides = [1, 1]} : vector<10x8xf32> to vector<8x8xf32>
    %10 = tpu.concatenate %7, %8, %9 in 1 : vector<8x8xf32>, vector<8x8xf32>, vector<8x8xf32> -> vector<8x24xf32>
    %11 = arith.truncf %10 : vector<8x24xf32> to vector<8x24xbf16>
    %c0_1 = arith.constant 0 : index
    %c0_2 = arith.constant 0 : index
    %12 = vector.load %arg3[%c0_1, %c0_2] : memref<24x32xbf16, #tpu.memory_space<vmem>>, vector<24x32xbf16>
    %cst = arith.constant dense<0.000000e+00> : vector<8x32xf32>
    %13 = tpu.matmul %11, %12, %cst {dimension_numbers = #tpu.dot_dimension_numbers<[1], [0], [0], [1], [0, 0, 1, 1], [], []>} : vector<8x24xbf16>, vector<24x32xbf16>, vector<8x32xf32> -> vector<8x32xf32>
    %c0_3 = arith.constant 0 : index
    %c0_4 = arith.constant 0 : index
    %14 = vector.load %arg4[%c0_3, %c0_4] : memref<1x32xf32, #tpu.memory_space<vmem>>, vector<1x32xf32>
    %15 = vector.broadcast %14 : vector<1x32xf32> to vector<8x32xf32>
    %16 = arith.addf %13, %15 : vector<8x32xf32>
    %cst_5 = arith.constant 0.000000e+00 : f32
    %17 = vector.broadcast %cst_5 : f32 to vector<8x32xf32>
    %18 = arith.maximumf %16, %17 : vector<8x32xf32>
    %c0_6 = arith.constant 0 : index
    %c0_7 = arith.constant 0 : index
    %c0_8 = arith.constant 0 : index
    %19 = vector.load %arg5[%c0_6, %c0_7, %c0_8] : memref<1x8x32xf32, #tpu.memory_space<vmem>>, vector<1x8x32xf32>
    %20 = vector.shape_cast %19 : vector<1x8x32xf32> to vector<8x32xf32>
    %21 = vector.shape_cast %18 : vector<8x32xf32> to vector<1x8x32xf32>
    tpu.vector_store %arg5[%c0_6, %c0_7, %c0_8], %21 {strides = array<i32>} : memref<1x8x32xf32, #tpu.memory_space<vmem>>, vector<1x8x32xf32>,
    return
  }
  func.func @transform_0(%arg0: i32, %arg1: i32) -> (i32, i32, i32) {
    %c0_i32 = arith.constant 0 : i32
    %c0_i32_0 = arith.constant 0 : i32
    %c0_i32_1 = arith.constant 0 : i32
    return %arg0, %c0_i32, %c0_i32_0 : i32, i32, i32
  }
  func.func @transform_1(%arg0: i32, %arg1: i32) -> (i32, i32) {
    %c0_i32 = arith.constant 0 : i32
    %c0_i32_0 = arith.constant 0 : i32
    %c0_i32_1 = arith.constant 0 : i32
    return %c0_i32, %c0_i32_0 : i32, i32
  }
  func.func @transform_2(%arg0: i32, %arg1: i32) -> (i32, i32) {
    %c0_i32 = arith.constant 0 : i32
    %c0_i32_0 = arith.constant 0 : i32
    %c0_i32_1 = arith.constant 0 : i32
    return %c0_i32, %c0_i32_0 : i32, i32
  }
  func.func @transform_3(%arg0: i32, %arg1: i32) -> (i32, i32, i32) {
    %c0_i32 = arith.constant 0 : i32
    %c0_i32_0 = arith.constant 0 : i32
    return %arg0, %arg1, %c0_i32 : i32, i32, i32
  }
}

</mosaic_0001>

<bundles_post_ra>
// kernel: tpu_custom_call.1
= control target key start
LH: loop header
LB: loop body
LE: loop exit
PB: predicated region body
PF: predicated region fallthrough
CT: control target
= control target key end

     0   :  { %8 = vsyncpa [#allocation4], 0  ;;  %s770_s0 = inlined_call_operand.vmem [shape: f32[2,32,8], index: 0, kind: input, shape index: {}]   ;;  %s771_s1 = inlined_call_operand.vmem [shape: bf16[24,32], index: 1, kind: input, shape index: {}]   ;;  %s772_s2 = inlined_call_operand.vmem [shape: f32[1,32], index: 2, kind: input, shape index: {}]   ;;  %s773_s3 = inlined_call_operand.hbm [shape: f32[2,32,32], index: 3, kind: output, shape index: {}]  }
   0x1   :  { %10 = vsyncpa [#allocation4 + $0x1], 0  ;;  %s614_s12 = smov 0   ;;  %s616_s13 = smov 0  }
   0x2   :  { %s618_s14 = smov 0   ;;  %s620_s15 = smov 0  }
   0x3   :  { %s622_s16 = smov 0   ;;  %s624_s17 = smov 0  }
   0x4   :  { %s626_s18 = smov 0   ;;  %s628_s19 = smov 0  }
   0x5 LB: > { %s385_s20 = sadd.s32 4294967295, %s586_s19   ;;  %s386_s21 = sadd.s32 4294967294, %s586_s19   ;;  %s586_s19 = sphi %s628_s19, %s16_s19   ;;  %s582_s18 = sphi %s626_s18, %s782_s18   ;;  %s578_s17 = sphi %s624_s17, %s781_s17   ;;  %s574_s16 = sphi %s622_s16, %s780_s16   ;;  %s570_s15 = sphi %s620_s15, %s779_s15   ;;  %s566_s14 = sphi %s618_s14, %s778_s14   ;;  %s562_s13 = sphi %s616_s13, %s777_s13   ;;  %s558_s12 = sphi %s614_s12, %s776_s12  }
   0x6   : > { %s25_s22 = sadd.s32 1, %s578_s17  ;;  %s28_s23 = sadd.s32 1, %s582_s18 }
   0x7   : > { %p26_p0 = scmp.ge.s32.totalorder %s25_s22, 4  ;;  %p115_p1 = scmp.ne.s32.totalorder %s566_s14, %s562_s13 }
   0x8   : > { %p116_p2 = scmp.eq.s32.totalorder %s385_s20, 7  ;;  %p121_p5 = scmp.ne.s32.totalorder %s562_s13, %s558_s12 }
   0x9   : > { %s784_s22 = smov (%p26_p0, %s25_s22), 0  ;;  %s786_s23 = smov (!%p26_p0, %s28_s23), %s582_s18 }
   0xa   : > { %s101_s24 = ssub.s32 %s578_s17, %s784_s22  ;;  %p665_p3 = por %p116_p2, %p115_p1 }
   0xb   : > { %p30_p4 = scmp.ge.s32.totalorder %s786_s23, 2  ;;  %p122_p6 = scmp.eq.s32.totalorder %s386_s21, 7 }
   0xc   : > { %p389_p7 = scmp.ge.s32.totalorder %s586_s19, 1  ;;  %p154_p9 = scmp.lt.s32.totalorder %s586_s19, 9 }
   0xd   : > { %s788_s23 = smov (%p30_p4, %s786_s23), 0  ;;  %p674_p8 = por %p122_p6, %p121_p5 }
   0xe   : > { %s100_s27 = ssub.s32 %s582_s18, %s788_s23  ;;  %s105_s28 = sadd.s32 1, %s566_s14 }
   0xf   : > { %s102_s29 = sor.u32 %s101_s24, %s100_s27  ;;  %p155_p10 = pnand %p389_p7, %p154_p9 }
  0x10   : > { %p103_p11 = scmp.eq.s32.totalorder %s102_s29, 0  ;;  %s175_s4 = sand.u32 (!%p155_p10), 1, %s562_s13  }
  0x11   : > { %158 = sbr.rel (%p155_p10) target bundleno = 375 (0x177), region = 32  ;;  %p178_p12 = scmp.lt.s32.totalorder (!%p155_p10), %s574_s16, 1 }
  0x12   : > { %s683_s30 = scalar_select %p103_p11, %s566_s14, %s105_s28  }
  0x13   : > { %s689_s5 = sshll.u32 (!%p155_p10), %s175_s4, 3  ;;  %p393_p13 = scmp.ne.s32.totalorder (!%p155_p10), %s570_s15, 0 }
  0x14   : > { %s177_s11 = scalar_lea.vmem (!%p155_p10), [#allocation3], %s689_s5 }
  0x16   : > { %s179_s6 = scalar_select %p178_p12, %s574_s16, 1 }
  0x17   : > { %187 = sbr.rel (%p393_p13) target bundleno = 32 (0x20), region = 36 }
  0x18   : > { %s404_s7 = sshll.u32 %s179_s6, 5 }
  0x19   : > { %s182_s10 = scalar_lea.vmem %s770_s0, %s404_s7 }
  0x1c   : > { %vm188_vm0 = vcmask 57344   ;;  %v191_v0 = vld [vmem:[%s182_s10] sm:$0xff]  ;;  %vm195_vm1 = vcmask 64512   ;;  %v192_v1 = vld [vmem:[%s182_s10 + $0x8] sm:$0xff]  ;;  %v193_v2 = vld [vmem:[%s182_s10 + $0x10] sm:$0xff]  ;;  %v588_v3 = vmov 0.0  }
  0x1d   : > { %189 = vst.msk [vmem:[#allocation2] sm:$0x1] %vm188_vm0, %v588_v3  ;;  %190 = vst.msk [vmem:[#allocation2 + $0x21] sm:$0x1] %vm188_vm0, %v588_v3  ;;  %v194_v4 = vld [vmem:[%s182_s10 + $0x18] sm:$0xff] }
  0x1e   : > { %196 = vst.msk [vmem:[#allocation2 + $0x1] sm:$0xff] %vm195_vm1, %v191_v0  ;;  %197 = vst.msk [vmem:[#allocation2 + $0x9] sm:$0xff] %vm195_vm1, %v192_v1 }
  0x1f   : > { %198 = vst.msk [vmem:[#allocation2 + $0x11] sm:$0xff] %vm195_vm1, %v193_v2  ;;  %199 = vst.msk [vmem:[#allocation2 + $0x19] sm:$0xff] %vm195_vm1, %v194_v4 }
  0x20 PF: > { %s394_s20 = sshll.u32 %s570_s15, 3  ;;  %v589_v5 = vmov 0.0   ;;  %v492_v6 = vld [vmem:[%s771_s1 + $0x8] ss:$0 sps:$4 sm:$0xff]   ;;  %vm206_vm2 = vcmask 1046528   ;;  %vm248_vm3 = vcmask 1043456  }
  0x21   : > { %408 = vmatprep.subr.bf16.mxu0 %v589_v5  ;;  %s201_s27 = scalar_lea.vmem [#allocation2], %s394_s20  ;;  %vm213_vm4 = vcmask 1045504   ;;  %v250_v13 = vsel %vm248_vm3, %v492_v6, 0  ;;  %v493_v15 = vld [vmem:[%s771_s1] sm:$0xff]   ;;  %vm590_vm5 = vmmov 0   ;;  %s591_s6 = smov 8  }
  0x22   : > { %409 = vmatpush3.bf16.msra.mxu0 %v250_v13  ;;  %412 = vmatprep.mubr.msk.bf16.mxu0 %vm590_vm5, %v589_v5  ;;  %s592_s7 = smov 16   ;;  %vm220_vm6 = vcmask 64512   ;;  %vm222_vm7 = vcmask 130048   ;;  %vm244_vm8 = vcmask 195584   ;;  %s400_s8 = sshll.u32 %s574_s16, 2  ;;  %vm293_vm9 = vcmask 261120  }
  0x23   : > { %410 = vmatprep.subr.bf16.mxu0 %v589_v5  ;;  %s307_s9 = sadd.s32 %s570_s15, %s400_s8  ;;  %v395_v22 = vld [vmem:[%s772_s2] ss:$0 sm:$0xff]  ;;  %s311_s24 = sshll.u32 %s177_s11, 4  ;;  %s716_s24 = int_to_ptr.vmem [resolvable:$true] %s311_s24 }
  0x24   : > { %s401_s21 = sshll.u32 %s307_s9, 7  ;;  %s296_s15 = scalar_lea.sflag [#allocation4], %s175_s4 }
  0x25   : > { %s714_s29 = scalar_lea.hbm %s773_s3, %s401_s21  ;;  %s494_s16 = scalar_lea.vmem %s716_s24, 128 }
  0x26   : > { %v202_v7 = vld [vmem:[%s201_s27] sm:$0xff]  ;;  %v203_v8 = vld [vmem:[%s201_s27 + $0x8] sm:$0x3]  ;;  %411 = vmatpush3.bf16.msra.mxu0 %v493_v15  ;;  %p495_p0 = scmp.ne.s32.totalorder %s716_s24, %s494_s16 }
  0x27   : > { %v207_v9 = vrot.slane %v202_v7, 1  ;;  %v208_v10 = vrot.slane %v203_v8, 1  ;;  %v214_v11 = vrot.slane %v202_v7, 2  ;;  %v215_v12 = vrot.slane %v203_v8, 2 }
  0x28   : > { %p496_p1 = pnand %p495_p0, %p665_p3 }
  0x29   : > { %v209_v14 = vsel %vm206_vm2, %v207_v9, %v208_v10  ;;  %v216_v16 = vsel %vm213_vm4, %v214_v11, %v215_v12 }
  0x2a   : > { %210 = vrot.lane.b32.xlu0 %v209_v14, %s591_s6  ;;  %p497_p2 = pneg %p496_p1  ;;  %s593_s6 = smov [#allocation3]  }
  0x2e   : > { %217 = vrot.lane.b32.xlu0 %v216_v16, %s592_s7  ;;  %s498_s7 = sshll.u32 %s593_s6, 4  ;;  %s499_s7 = int_to_ptr.vmem [resolvable:$false] %s498_s7 }
  0x2f   : > { %s500_s8 = scalar_lea.vmem %s499_s7, 256  ;;  %p501_p4 = scmp.lt.s32.totalorder %s716_s24, %s499_s7 }
  0x30   : > { %p502_p5 = scmp.lt.s32.totalorder %s500_s8, %s494_s16 }
  0x32   : > { %p503_p6 = por %p502_p5, %p501_p4 }
  0x34   : > { %p504_p7 = pnand %p503_p6, %p497_p2 }
  0x9c   : > { %v211_v17 = vpop.permute.xlu0 %210 }
  0x9d   : > { %v221_v18 = vsel %vm220_vm6, %v202_v7, %v211_v17 }
  0xa0   : > { %v218_v19 = vpop.permute.xlu0 %217 }
  0xa1   : > { %v223_v20 = vsel %vm222_vm7, %v221_v18, %v218_v19 }
  0xa2   : > { %v224_v21 = vpack.c.bf16 %v223_v20, %v223_v20 }
  0xa4   : > { %413 = vmatmul.mubr.msk.bf16.vlgmr.msra.gmra.mxu0 %vm244_vm8, %v224_v21 }
 0x164   : > { %v286_v23 = vpop.f32.mrf.mxu0 }
 0x165   : > { %v287_v24 = vadd.f32 %v395_v22, %v286_v23 }
 0x166   : > { %v414_v25 = vpop.f32.mrf.mxu0 }
 0x167   : > { %v292_v26 = vmax.f32 %v287_v24, 0.0 }
 0x168   : > { %v289_v27 = vpop.f32.mrf.mxu0 }
 0x169   : > { %294 = vst.msk [vmem:[%s177_s11] sm:$0xff] %vm293_vm9, %v292_v26 }
 0x16a   : > { %v415_v28 = vpop.f32.mrf.mxu0 }
 0x16b   : > { %507 = shalt.err (!%p504_p7)
}
 0x16c   : > { %s508_s5 = scalar_lea.hbm %s714_s29, 128  ;;  %s512_s9 = scalar_lea.hbm %s773_s3, 1024 }
 0x16d   : > { %p509_p9 = scmp.ne.s32.totalorder %s714_s29, %s508_s5  ;;  %p513_p12 = scmp.lt.s32.totalorder %s714_s29, %s773_s3 }
 0x16e   : > { %p514_p13 = scmp.lt.s32.totalorder %s512_s9, %s508_s5 }
 0x16f   : > { %p510_p10 = pnand %p509_p9, %p665_p3 }
 0x170   : > { %p515_p0 = por %p514_p13, %p513_p12 }
 0x171   : > { %p511_p11 = pneg %p510_p10 }
 0x173   : > { %p516_p1 = pnand %p515_p0, %p511_p11 }
 0x175   : > { %519 = shalt.err (!%p516_p1)
}
 0x176   : > { %416 = dma.vmem_to_hbm [thread:$0]  (%p665_p3), %s716_s24, 128, %s714_s29, %s296_s15  }
 0x177 PF: > { %p422_p2 = scmp.ge.s32.totalorder %s586_s19, 2  ;;  %s323_s21 = sand.u32 1, %s558_s12  }
 0x178   : > { %s324_s27 = scalar_lea.sflag [#allocation4], %s323_s21 }
 0x179   : > { %p419_p4 = pnand %p422_p2, %p674_p8 }
 0x17b   : > { %p420_p5 = pneg %p419_p4 }
 0x17d   : > { %553 = dma.done.wait (%p420_p5), %s324_s27, 128  }
 0x17e   : > { %555 = vsyncadd (%p420_p5), %s324_s27, 4294967168  ;;  %s16_s19 = sadd.s32 1, %s586_s19   ;;  %s776_s12 = smov %s562_s13 }
 0x17f   : > { %p13_p6 = scmp.ge.s32.totalorder %s16_s19, 10   ;;  %s777_s13 = smov %s566_s14 }
 0x180   : > { %s778_s14 = smov %s683_s30  ;;  %s779_s15 = smov %s578_s17 }
 0x181   : > { %s780_s16 = smov %s582_s18  ;;  %s781_s17 = smov %s784_s22 }
 0x182   : > { %s782_s18 = smov %s788_s23  ;;  %15 = sbr.rel (!%p13_p6) target bundleno = 5 (0x5), region = 72 }
 0x187   :  { %329 = vsyncpa [#allocation4], 1 }
 0x188   :  { %331 = vsyncpa [#allocation4 + $0x1], 1 }

</bundles_post_ra>
